<compile_context>
chip_gen: v7x
topology: tpu7x:2x2x1
jax: 0.10.0
libtpu: 0.0.40
codegen_flags: <defaults>
</compile_context>

<pallas_src>
import numpy as np

import jax
import jax.numpy as jnp
from jax.experimental import pallas as pl
from jax.experimental.pallas import tpu as pltpu


# ---------------- Pallas kernel: 4 real MXU matmuls per batch tile ----------------
def _clements_apply_kernel(ur_ref, ui_ref, xr_ref, xi_ref, or_ref, oi_ref):
    # ur_ref / ui_ref : (F, F) real/imag mesh matrix (resident, constant index_map)
    # xr_ref / xi_ref : (F, tb) real/imag field tile
    # or_ref / oi_ref : (F, tb) real/imag output tile
    ur = ur_ref[...]
    ui = ui_ref[...]
    xr = xr_ref[...]
    xi = xi_ref[...]
    or_ref[...] = (jnp.dot(ur, xr, preferred_element_type=jnp.float32)
                   - jnp.dot(ui, xi, preferred_element_type=jnp.float32))
    oi_ref[...] = (jnp.dot(ui, xr, preferred_element_type=jnp.float32)
                   + jnp.dot(ur, xi, preferred_element_type=jnp.float32))


# ---------------- generation-aware sizing ----------------
def _tpu_generation():
    """Returns (num_tensorcores_per_chip, vmem_budget_bytes)."""
    kind = ""
    try:
        kind = jax.devices()[0].device_kind.lower()
    except Exception:
        pass
    if "7" in kind:                            # v7x: 2 TCs/chip, 64 MiB VMEM per TC
        return 2, 48 * 1024 * 1024
    if ("v5" in kind) or ("v6" in kind):       # v5e/v6e: 1 TC, 128 MiB VMEM
        return 1, 100 * 1024 * 1024
    return 1, 48 * 1024 * 1024                 # unknown: conservative


def _pick_tb(F, B, vmem_budget, num_tc, single_buffer_w, tb_cap=None):
    """Lane-dense batch tile (multiple of 128) sized against the VMEM budget."""
    if B <= 128:
        return B                               # single (possibly masked-lane) tile
    if tb_cap is None:
        # Small row count -> big lane tiles to amortize per-grid-step overhead.
        tb_cap = 8192 if 2 * F <= 256 else 2048
    w_bufs = 1 if single_buffer_w else 2
    w_bytes = w_bufs * 2 * F * F * 4                       # Ur + Ui buffers
    per_lane = 4 * 2 * F * 4                               # (2 in + 2 out) x dbl-buf x F x 4B
    fit = (vmem_budget - w_bytes) // per_lane
    tb = min(tb_cap, B, max(128, fit))
    tb = max(128, (tb // 128) * 128)
    if num_tc > 1 and tb >= B:
        # Only split when a second TensorCore exists to take the work (megacore).
        share = -(-B // num_tc)
        tb = max(128, ((share + 127) // 128) * 128)
    return tb


# ---------------- mesh composition (once per parameter update) ----------------
def compose_mesh_matrices(layer_angles, diag_angle, num_features):
    """Compose all PSDC layers + Diag1 into real/imag F x F matrices.

    Batch-independent: compute once per parameter update and reuse across forwards."""
    U = ref_forward(jnp.eye(num_features, dtype=jnp.complex64), layer_angles, diag_angle)
    return jnp.real(U).astype(jnp.float32), jnp.imag(U).astype(jnp.float32)


# ---------------- forward: apply the composed mesh with the Pallas kernel ----------------
def apply_clements(Ur, Ui, xr, xi, tb_cap=None):
    """xr, xi: (F, B) float32 real/imag planes.  Returns (out_r, out_i)."""
    F, B = xr.shape
    num_tc, vmem_budget = _tpu_generation()

    # Single-buffer the resident matrices only when they are big enough to matter.
    single_buffer_w = F >= 512
    tb = _pick_tb(F, B, vmem_budget, num_tc, single_buffer_w, tb_cap)
    grid = (pl.cdiv(B, tb),)

    w_kwargs = {}
    if single_buffer_w:
        # Constant index_map -> never re-fetched; drop the second pipeline buffer.
        w_kwargs = dict(pipeline_mode=pl.Buffered(1))
    w_spec = pl.BlockSpec((F, F), lambda b: (0, 0), **w_kwargs)
    x_spec = pl.BlockSpec((F, tb), lambda b: (0, b))

    need = (1 if single_buffer_w else 2) * 2 * F * F * 4 + 4 * 2 * F * tb * 4
    vmem_limit = int(min(vmem_budget, max(32 * 1024 * 1024, need + 8 * 1024 * 1024)))

    cost = pl.CostEstimate(
        flops=8 * F * F * B,                                  # 4 real F x F x B matmuls
        transcendentals=0,
        bytes_accessed=2 * F * F * 4 + 4 * F * B * 4)         # Ur+Ui, in + out fields

    out_r, out_i = pl.pallas_call(
        _clements_apply_kernel,
        out_shape=(jax.ShapeDtypeStruct((F, B), jnp.float32),
                   jax.ShapeDtypeStruct((F, B), jnp.float32)),
        grid_spec=pltpu.PrefetchScalarGridSpec(
            num_scalar_prefetch=0,
            grid=grid,
            in_specs=[w_spec, w_spec, x_spec, x_spec],
            out_specs=(x_spec, x_spec)),
        compiler_params=pltpu.CompilerParams(
            dimension_semantics=("parallel",),
            vmem_limit_bytes=vmem_limit),
        cost_estimate=cost,
    )(Ur, Ui, xr.astype(jnp.float32), xi.astype(jnp.float32))
    return out_r, out_i


def variable_clements_diag1(xr, xi, layer_angles, diag_angle, tb_cap=None):
    """Convenience wrapper: composes the mesh then applies it.  For repeated forwards
    with fixed parameters, call compose_mesh_matrices once and use apply_clements."""
    Ur, Ui = compose_mesh_matrices(layer_angles, diag_angle, xr.shape[0])
    return apply_clements(Ur, Ui, xr, xi, tb_cap)


# ---------------- parameter init (matches the module's __init__) ----------------
def build_params(key, F, L):
    """MZIA/MZIB angles ~ U(-pi, pi); Diag1 angle = zeros(F, 1)."""
    assert F % 2 == 0, "num_features must be even (H128 in the reference config)"
    PI = float(np.pi)
    layer_angles = []
    for i in range(L):
        key, k0, k1 = jax.random.split(key, 3)
        half = F // 2 if i % 2 == 0 else (F - 1) // 2
        a0 = jax.random.uniform(k0, (half,), jnp.float32, -PI, PI)
        a1 = jax.random.uniform(k1, (half,), jnp.float32, -PI, PI)
        layer_angles.append((a0, a1))
    diag_angle = jnp.zeros((F, 1), jnp.float32)
    return layer_angles, diag_angle


# ---------------- pure-JAX reference (mirrors the PyTorch module) ----------------
def _psdc_ref(X, Y, angle):
    t = X * jnp.exp(1j * angle)[:, None]
    outX = (t + 1j * Y) * (1.0 / np.sqrt(2.0))
    outY = (1j * t + Y) * (1.0 / np.sqrt(2.0))
    return outX, outY


def ref_forward(x, layer_angles, diag_angle):
    for i, (a0, a1) in enumerate(layer_angles):
        if i % 2 == 0:          # MZIA: pairs (0,1),(2,3),...
            X, Y = x[0:-1:2, :], x[1::2, :]
            X, Y = _psdc_ref(X, Y, a0)
            X, Y = _psdc_ref(X, Y, a1)
            out = jnp.zeros_like(x)
            out = out.at[0:-1:2, :].set(X).at[1::2, :].set(Y)
        else:                   # MZIB: rows 0 and F-1 pass through; pairs (1,2),(3,4),...
            out = x
            X, Y = x[1:-1:2, :], x[2::2, :]
            X, Y = _psdc_ref(X, Y, a0)
            X, Y = _psdc_ref(X, Y, a1)
            out = out.at[1:-1:2, :].set(X).at[2::2, :].set(Y)
        x = out
    phase = jnp.exp(1j * diag_angle[:, 0])[:, None]   # Diag1 (cos/sin rotation)
    return x * phase


if __name__ == "__main__":
    F, B, L = 16, 256, 5   # num_features, batch, num_layers (A,B,A,B,A)

    key = jax.random.PRNGKey(0)
    key, kx, ky = jax.random.split(key, 3)
    xr = jax.random.normal(kx, (F, B), jnp.float32)
    xi = jax.random.normal(ky, (F, B), jnp.float32)
    layer_angles, diag_angle = build_params(key, F, L)

    # Compose once (per parameter update), then apply via the Pallas kernel.
    Ur, Ui = compose_mesh_matrices(layer_angles, diag_angle, F)
    out_r, out_i = apply_clements(Ur, Ui, xr, xi)
    out_r = jax.block_until_ready(out_r)
    out_i = jax.block_until_ready(out_i)

    ref = ref_forward(xr.astype(jnp.complex64) + 1j * xi.astype(jnp.complex64),
                      layer_angles, diag_angle)
    np.testing.assert_allclose(np.asarray(out_r), np.asarray(ref.real), atol=1e-4, rtol=1e-4)
    np.testing.assert_allclose(np.asarray(out_i), np.asarray(ref.imag), atol=1e-4, rtol=1e-4)

    print("KERNEL_OK")
</pallas_src>

<mosaic_0001>
module attributes {stable_mosaic.version = 11 : i64} {
  func.func @_clements_apply_kernel(%arg0: i32, %arg1: memref<16x16xf32, #tpu.memory_space<vmem>>, %arg2: memref<16x16xf32, #tpu.memory_space<vmem>>, %arg3: memref<16x256xf32, #tpu.memory_space<vmem>>, %arg4: memref<16x256xf32, #tpu.memory_space<vmem>>, %arg5: memref<16x256xf32, #tpu.memory_space<vmem>>, %arg6: memref<16x256xf32, #tpu.memory_space<vmem>>) attributes {dimension_semantics = [#tpu.dimension_semantics<parallel>], iteration_bounds = array<i64: 1>, scalar_prefetch = 0 : i64, scratch_operands = 0 : i64, tpu.core_type = #tpu.core_type<tc>, window_params = [{pipeline_mode = #tpu.pipeline_mode<synchronous>, transform_indices = @transform_0, window_bounds = array<i64: 16, 16>}, {pipeline_mode = #tpu.pipeline_mode<synchronous>, transform_indices = @transform_1, window_bounds = array<i64: 16, 16>}, {transform_indices = @transform_2, window_bounds = array<i64: 16, 256>}, {transform_indices = @transform_3, window_bounds = array<i64: 16, 256>}, {transform_indices = @transform_4, window_bounds = array<i64: 16, 256>}, {transform_indices = @transform_5, window_bounds = array<i64: 16, 256>}]} {
    %c0 = arith.constant 0 : index
    %c0_0 = arith.constant 0 : index
    %0 = vector.load %arg1[%c0, %c0_0] : memref<16x16xf32, #tpu.memory_space<vmem>>, vector<16x16xf32>
    %c0_1 = arith.constant 0 : index
    %c0_2 = arith.constant 0 : index
    %1 = vector.load %arg2[%c0_1, %c0_2] : memref<16x16xf32, #tpu.memory_space<vmem>>, vector<16x16xf32>
    %c0_3 = arith.constant 0 : index
    %c0_4 = arith.constant 0 : index
    %2 = vector.load %arg3[%c0_3, %c0_4] : memref<16x256xf32, #tpu.memory_space<vmem>>, vector<16x256xf32>
    %c0_5 = arith.constant 0 : index
    %c0_6 = arith.constant 0 : index
    %3 = vector.load %arg4[%c0_5, %c0_6] : memref<16x256xf32, #tpu.memory_space<vmem>>, vector<16x256xf32>
    %cst = arith.constant dense<0.000000e+00> : vector<16x256xf32>
    %4 = tpu.matmul %0, %2, %cst {dimension_numbers = #tpu.dot_dimension_numbers<[1], [0], [0], [1], [0, 0, 1, 1], [], []>} : vector<16x16xf32>, vector<16x256xf32>, vector<16x256xf32> -> vector<16x256xf32>
    %cst_7 = arith.constant dense<0.000000e+00> : vector<16x256xf32>
    %5 = tpu.matmul %1, %3, %cst_7 {dimension_numbers = #tpu.dot_dimension_numbers<[1], [0], [0], [1], [0, 0, 1, 1], [], []>} : vector<16x16xf32>, vector<16x256xf32>, vector<16x256xf32> -> vector<16x256xf32>
    %6 = arith.subf %4, %5 : vector<16x256xf32>
    %c0_8 = arith.constant 0 : index
    %c0_9 = arith.constant 0 : index
    %7 = vector.load %arg5[%c0_8, %c0_9] : memref<16x256xf32, #tpu.memory_space<vmem>>, vector<16x256xf32>
    tpu.vector_store %arg5[%c0_8, %c0_9], %6 {strides = array<i32>} : memref<16x256xf32, #tpu.memory_space<vmem>>, vector<16x256xf32>,
    %cst_10 = arith.constant dense<0.000000e+00> : vector<16x256xf32>
    %8 = tpu.matmul %1, %2, %cst_10 {dimension_numbers = #tpu.dot_dimension_numbers<[1], [0], [0], [1], [0, 0, 1, 1], [], []>} : vector<16x16xf32>, vector<16x256xf32>, vector<16x256xf32> -> vector<16x256xf32>
    %cst_11 = arith.constant dense<0.000000e+00> : vector<16x256xf32>
    %9 = tpu.matmul %0, %3, %cst_11 {dimension_numbers = #tpu.dot_dimension_numbers<[1], [0], [0], [1], [0, 0, 1, 1], [], []>} : vector<16x16xf32>, vector<16x256xf32>, vector<16x256xf32> -> vector<16x256xf32>
    %10 = arith.addf %8, %9 : vector<16x256xf32>
    %c0_12 = arith.constant 0 : index
    %c0_13 = arith.constant 0 : index
    %11 = vector.load %arg6[%c0_12, %c0_13] : memref<16x256xf32, #tpu.memory_space<vmem>>, vector<16x256xf32>
    tpu.vector_store %arg6[%c0_12, %c0_13], %10 {strides = array<i32>} : memref<16x256xf32, #tpu.memory_space<vmem>>, vector<16x256xf32>,
    return
  }
  func.func @transform_0(%arg0: i32) -> (i32, i32) {
    %c0_i32 = arith.constant 0 : i32
    %c0_i32_0 = arith.constant 0 : i32
    %c0_i32_1 = arith.constant 0 : i32
    return %c0_i32, %c0_i32_0 : i32, i32
  }
  func.func @transform_1(%arg0: i32) -> (i32, i32) {
    %c0_i32 = arith.constant 0 : i32
    %c0_i32_0 = arith.constant 0 : i32
    %c0_i32_1 = arith.constant 0 : i32
    return %c0_i32, %c0_i32_0 : i32, i32
  }
  func.func @transform_2(%arg0: i32) -> (i32, i32) {
    %c0_i32 = arith.constant 0 : i32
    %c0_i32_0 = arith.constant 0 : i32
    return %c0_i32, %arg0 : i32, i32
  }
  func.func @transform_3(%arg0: i32) -> (i32, i32) {
    %c0_i32 = arith.constant 0 : i32
    %c0_i32_0 = arith.constant 0 : i32
    return %c0_i32, %arg0 : i32, i32
  }
  func.func @transform_4(%arg0: i32) -> (i32, i32) {
    %c0_i32 = arith.constant 0 : i32
    %c0_i32_0 = arith.constant 0 : i32
    return %c0_i32, %arg0 : i32, i32
  }
  func.func @transform_5(%arg0: i32) -> (i32, i32) {
    %c0_i32 = arith.constant 0 : i32
    %c0_i32_0 = arith.constant 0 : i32
    return %c0_i32, %arg0 : i32, i32
  }
}

</mosaic_0001>

<bundles_post_ra>
// kernel: tpu_custom_call.1
= control target key start
LH: loop header
LB: loop body
LE: loop exit
PB: predicated region body
PF: predicated region fallthrough
CT: control target
= control target key end

     0   :  { %11 = vsyncpa [#allocation3], 0  ;;  %s784_s0 = inlined_call_operand.hbm [shape: f32[16,16], index: 0, kind: input, shape index: {}]   ;;  %s785_s1 = inlined_call_operand.hbm [shape: f32[16,16], index: 1, kind: input, shape index: {}]   ;;  %s786_s2 = inlined_call_operand.hbm [shape: f32[16,256], index: 2, kind: input, shape index: {}]   ;;  %s787_s3 = inlined_call_operand.hbm [shape: f32[16,256], index: 3, kind: input, shape index: {}]   ;;  %s788_s4 = inlined_call_operand.hbm [shape: f32[16,256], index: 4, kind: output, shape index: {0}]   ;;  %s789_s5 = inlined_call_operand.hbm [shape: f32[16,256], index: 5, kind: output, shape index: {1}]  }
   0x1   :  { %12 = vsyncpa [#allocation6], 0 }
   0x2   :  { %13 = vsyncpa [#allocation9], 0 }
   0x3   :  { %14 = vsyncpa [#allocation4], 0 }
   0x4   :  { %15 = vsyncpa [#allocation12], 0  ;;  %s637_s18 = smov [#allocation5]   ;;  %s638_s20 = smov [#allocation2]  }
   0x5   :  { %s33_s19 = sshll.u32 %s637_s18, 4  ;;  %s21_s21 = sshll.u32 %s638_s20, 4  ;;  %s34_s19 = int_to_ptr.vmem [resolvable:$true] %s33_s19  ;;  %s678_s21 = int_to_ptr.vmem [resolvable:$true] %s21_s21 }
   0x6   :  { %s495_s24 = scalar_lea.hbm %s785_s1, 256 }
   0x7   :  { %p496_p0 = scmp.ne.s32.totalorder %s785_s1, %s495_s24  ;;  %p499_p1 = scmp.lt.u32.totalorder %s495_s24, %s785_s1 }
   0x9   :  { %p501_p2 = pnand %p499_p1, %p496_p0 }
   0xb   :  { %504 = shalt.err (!%p501_p2)
}
   0xc   :  { %s505_s29 = scalar_lea.vmem %s34_s19, 256  ;;  %p510_p4 = scmp.lt.s32.totalorder %s34_s19, %s34_s19 }
   0xd   :  { %p506_p3 = scmp.ne.s32.totalorder %s34_s19, %s505_s29  ;;  %p511_p5 = scmp.lt.s32.totalorder %s505_s29, %s505_s29 }
   0xf   :  { %p512_p6 = por %p511_p5, %p510_p4 }
  0x11   :  { %p513_p7 = pnand %p512_p6, %p506_p3 }
  0x13   :  { %516 = shalt.err (!%p513_p7)
}
  0x14   :  { %s639_s30 = smov 128   ;;  %s640_s6 = smov 8  }
  0x15   :  { %39 = dma.hbm_to_vmem [thread:$0]  %s785_s1, 256, %s34_s19, [#allocation6], %s639_s30, %s639_s30, %s640_s6  }
  0x16   :  { %s517_s11 = scalar_lea.hbm %s784_s0, 256 }
  0x17   :  { %p518_p8 = scmp.ne.s32.totalorder %s784_s0, %s517_s11  ;;  %p521_p9 = scmp.lt.u32.totalorder %s517_s11, %s784_s0 }
  0x19   :  { %p523_p10 = pnand %p521_p9, %p518_p8 }
  0x1b   :  { %526 = shalt.err (!%p523_p10)
}
  0x1c   :  { %s527_s16 = scalar_lea.vmem %s678_s21, 256  ;;  %p532_p12 = scmp.lt.s32.totalorder %s678_s21, %s678_s21 }
  0x1d   :  { %p528_p11 = scmp.ne.s32.totalorder %s678_s21, %s527_s16  ;;  %p533_p13 = scmp.lt.s32.totalorder %s527_s16, %s527_s16 }
  0x1f   :  { %p534_p0 = por %p533_p13, %p532_p12 }
  0x21   :  { %p535_p1 = pnand %p534_p0, %p528_p11 }
  0x23   :  { %538 = shalt.err (!%p535_p1)
}
  0x24   :  { %27 = dma.hbm_to_vmem [thread:$0]  %s784_s0, 256, %s678_s21, [#allocation3], %s639_s30, %s639_s30, %s640_s6  }
  0x25   :  { %s641_s18 = smov [#allocation7]   ;;  %s539_s23 = scalar_lea.hbm %s786_s2, 512 }
  0x26   :  { %s45_s19 = sshll.u32 %s641_s18, 4  ;;  %p540_p2 = scmp.ne.s32.totalorder %s786_s2, %s539_s23  ;;  %s46_s19 = int_to_ptr.vmem [resolvable:$true] %s45_s19 }
  0x27   :  { %p543_p3 = scmp.lt.u32.totalorder %s539_s23, %s786_s2 }
  0x29   :  { %p545_p4 = pnand %p543_p3, %p540_p2 }
  0x2b   :  { %548 = shalt.err (!%p545_p4)
}
  0x2c   :  { %s549_s28 = scalar_lea.vmem %s46_s19, 512  ;;  %p554_p6 = scmp.lt.s32.totalorder %s46_s19, %s46_s19 }
  0x2d   :  { %p550_p5 = scmp.ne.s32.totalorder %s46_s19, %s549_s28  ;;  %p555_p7 = scmp.lt.s32.totalorder %s549_s28, %s549_s28 }
  0x2f   :  { %p556_p8 = por %p555_p7, %p554_p6 }
  0x31   :  { %p557_p9 = pnand %p556_p8, %p550_p5 }
  0x33   :  { %560 = shalt.err (!%p557_p9)
}
  0x34   :  { %s642_s0 = smov 256   ;;  %s643_s21 = smov 16  }
  0x35   :  { %51 = dma.hbm_to_vmem [thread:$0]  %s786_s2, 512, %s46_s19, [#allocation6], %s642_s0, %s642_s0, %s643_s21  }
  0x36   :  { %s644_s6 = smov [#allocation8]   ;;  %s561_s10 = scalar_lea.hbm %s787_s3, 512 }
  0x37   :  { %s57_s7 = sshll.u32 %s644_s6, 4  ;;  %p562_p10 = scmp.ne.s32.totalorder %s787_s3, %s561_s10  ;;  %s58_s7 = int_to_ptr.vmem [resolvable:$true] %s57_s7 }
  0x38   :  { %p565_p11 = scmp.lt.u32.totalorder %s561_s10, %s787_s3 }
  0x3a   :  { %p567_p12 = pnand %p565_p11, %p562_p10 }
  0x3c   :  { %570 = shalt.err (!%p567_p12)
}
  0x3d   :  { %s571_s15 = scalar_lea.vmem %s58_s7, 512  ;;  %p576_p0 = scmp.lt.s32.totalorder %s58_s7, %s58_s7 }
  0x3e   :  { %p572_p13 = scmp.ne.s32.totalorder %s58_s7, %s571_s15  ;;  %p577_p1 = scmp.lt.s32.totalorder %s571_s15, %s571_s15 }
  0x40   :  { %p578_p2 = por %p577_p1, %p576_p0 }
  0x42   :  { %p579_p3 = pnand %p578_p2, %p572_p13 }
  0x44   :  { %582 = shalt.err (!%p579_p3)
}
  0x45   :  { %63 = dma.hbm_to_vmem [thread:$0]  %s787_s3, 512, %s58_s7, [#allocation9], %s642_s0, %s642_s0, %s643_s21  }
  0x46   :  { %627 = dma.done.wait [#allocation3], 256  }
  0x47   :  { %628 = vsyncadd [#allocation3], 4294967040 }
  0x48   :  { %629 = dma.done.wait [#allocation6], 768  }
  0x49   :  { %630 = vsyncadd [#allocation6], 4294966528 }
  0x4a   :  { %631 = dma.done.wait [#allocation9], 512  }
  0x4b   :  { %632 = vsyncadd [#allocation9], 4294966784  ;;  %v645_v0 = vmov 0.0   ;;  %v81_v1 = vld [vmem:[#allocation7 + $0x8] sm:$0xff]  ;;  %v83_v2 = vld [vmem:[#allocation7 + $0x18] sm:$0xff]  ;;  %vm88_vm0 = vcmask 130048  }
  0x4c   :  { %159 = vmatprep.mubr.f32.mxu1 %v645_v0  ;;  %327 = vmatprep.mubr.f32.mxu0 %v645_v0  ;;  %v85_v3 = vld [vmem:[#allocation8 + $0x8] sm:$0xff]  ;;  %v464_v4 = vpack.c.bf16 %v83_v2, %v81_v1  ;;  %v87_v5 = vld [vmem:[#allocation8 + $0x18] sm:$0xff]  ;;  %v80_v6 = vld [vmem:[#allocation7] sm:$0xff]  ;;  %s646_s3 = smov [#allocation11]   ;;  %s647_s17 = smov [#allocation10]  }
  0x4d   :  { %v82_v7 = vld [vmem:[#allocation7 + $0x10] sm:$0xff]  ;;  %v468_v8 = vpack.c.bf16 %v87_v5, %v85_v3  ;;  %v84_v10 = vld [vmem:[#allocation8] sm:$0xff]  ;;  %v77_v14 = vld [vmem:[#allocation2 + $0x8] sm:$0xff]  ;;  %s438_s1 = sshll.u32 %s646_s3, 4  ;;  %s426_s18 = sshll.u32 %s647_s17, 4  ;;  %s439_s1 = int_to_ptr.vmem [resolvable:$true] %s438_s1  ;;  %s747_s18 = int_to_ptr.vmem [resolvable:$true] %s426_s18 }
  0x4e   :  { %v466_v9 = vpack.c.bf16 %v82_v7, %v80_v6  ;;  %v86_v11 = vld [vmem:[#allocation8 + $0x10] sm:$0xff]  ;;  %465 = vmatprep.subr.bf16.mxu1 %v464_v4  ;;  %v76_v13 = vld [vmem:[#allocation2] sm:$0xff]  ;;  %v79_v16 = vld [vmem:[#allocation5 + $0x8] sm:$0xff]  ;;  %s583_s19 = scalar_lea.vmem %s439_s1, 512  ;;  %p588_p5 = scmp.lt.s32.totalorder %s439_s1, %s439_s1 }
  0x4f   :  { %v470_v12 = vpack.c.bf16 %v86_v11, %v84_v10  ;;  %473 = vmatprep.subr.bf16.mxu0 %v468_v8  ;;  %v78_v15 = vld [vmem:[#allocation5] sm:$0xff]  ;;  %p584_p4 = scmp.ne.s32.totalorder %s439_s1, %s583_s19  ;;  %p589_p6 = scmp.lt.s32.totalorder %s583_s19, %s583_s19 }
  0x50   :  { %467 = vmatpush1.bf16.msra.mxu1 %v466_v9 }
  0x51   :  { %475 = vmatpush1.bf16.msra.mxu0 %v470_v12  ;;  %469 = vmatprep.subr.bf16.mxu1 %v468_v8  ;;  %p590_p7 = por %p589_p6, %p588_p5 }
  0x52   :  { %477 = vmatprep.subr.bf16.mxu0 %v464_v4 }
  0x53   :  { %456 = vmatmul.mubr.msk.f32.vlgmr.msra.gmra.mrb[0].mxu1 %vm88_vm0, %v76_v13  ;;  %p591_p8 = pnand %p590_p7, %p584_p4 }
  0x54   :  { %460 = vmatmul.mubr.msk.f32.vlgmr.msra.gmra.mrb[0].mxu0 %vm88_vm0, %v76_v13  ;;  %471 = vmatpush1.bf16.msra.mxu1 %v470_v12 }
  0x55   :  { %165 = vmatprep.mubr.f32.mxu1 %v645_v0  ;;  %333 = vmatprep.mubr.f32.mxu0 %v645_v0 }
  0x56   :  { %479 = vmatpush1.bf16.msra.mxu0 %v466_v9 }
  0x57   :  { %457 = vmatmul.mubr.msk.f32.gmra.mrb[2].mxu1 %vm88_vm0, %v77_v14 }
  0x58   :  { %461 = vmatmul.mubr.msk.f32.gmra.mrb[2].mxu0 %vm88_vm0, %v77_v14  ;;  %242 = vmatprep.mubr.f32.mxu1 %v645_v0 }
  0x59   :  { %404 = vmatprep.mubr.f32.mxu0 %v645_v0 }
  0x5b   :  { %458 = vmatmul.mubr.msk.f32.vlgmr.msra.gmra.mrb[4].mxu1 %vm88_vm0, %v78_v15 }
  0x5c   :  { %462 = vmatmul.mubr.msk.f32.vlgmr.msra.gmra.mrb[0].mxu0 %vm88_vm0, %v78_v15  ;;  %248 = vmatprep.mubr.f32.mxu1 %v645_v0 }
  0x5d   :  { %410 = vmatprep.mubr.f32.mxu0 %v645_v0 }
  0x5f   :  { %459 = vmatmul.mubr.msk.f32.gmra.mrb[6].mxu1 %vm88_vm0, %v79_v16 }
  0x60   :  { %463 = vmatmul.mubr.msk.f32.gmra.mrb[2].mxu0 %vm88_vm0, %v79_v16 }
 0x126   :  { %v161_v17 = vpop.f32.mrb[0].mxu1 }
 0x127   :  { %v163_v18 = vpop.f32.mrb[1].mxu1 }
 0x12a   :  { %v167_v19 = vpop.f32.mrb[2].mxu1 }
 0x12b   :  { %v169_v20 = vpop.f32.mrb[3].mxu1 }
 0x12e   :  { %v244_v21 = vpop.f32.mrb[4].mxu1 }
 0x12f   :  { %v255_v22 = vsub.f32 %v161_v17, %v244_v21  ;;  %v406_v23 = vpop.f32.mrb[0].mxu0  ;;  %v246_v24 = vpop.f32.mrb[5].mxu1 }
 0x130   :  { %417 = vst [vmem:[#allocation11] sm:$0xff] %v406_v23  ;;  %v256_v25 = vsub.f32 %v163_v18, %v246_v24  ;;  %v408_v26 = vpop.f32.mrb[1].mxu0 }
 0x131   :  { %259 = vst [vmem:[#allocation10] sm:$0xff] %v255_v22  ;;  %418 = vst [vmem:[#allocation11 + $0x8] sm:$0xff] %v408_v26 }
 0x132   :  { %260 = vst [vmem:[#allocation10 + $0x8] sm:$0xff] %v256_v25  ;;  %v250_v27 = vpop.f32.mrb[6].mxu1 }
 0x133   :  { %v257_v28 = vsub.f32 %v167_v19, %v250_v27  ;;  %v412_v29 = vpop.f32.mrb[2].mxu0  ;;  %v252_v30 = vpop.f32.mrb[7].mxu1 }
 0x134   :  { %419 = vst [vmem:[#allocation11 + $0x10] sm:$0xff] %v412_v29  ;;  %v258_v31 = vsub.f32 %v169_v20, %v252_v30  ;;  %v414_v32 = vpop.f32.mrb[3].mxu0 }
 0x135   :  { %261 = vst [vmem:[#allocation10 + $0x10] sm:$0xff] %v257_v28  ;;  %420 = vst [vmem:[#allocation11 + $0x18] sm:$0xff] %v414_v32 }
 0x136   :  { %262 = vst [vmem:[#allocation10 + $0x18] sm:$0xff] %v258_v31 }
 0x137   :  { %594 = shalt.err (!%p591_p8)
}
 0x138   :  { %s595_s23 = scalar_lea.hbm %s789_s5, 512 }
 0x139   :  { %p596_p9 = scmp.ne.s32.totalorder %s789_s5, %s595_s23  ;;  %p599_p10 = scmp.lt.u32.totalorder %s595_s23, %s789_s5 }
 0x13b   :  { %p601_p11 = pnand %p599_p10, %p596_p9 }
 0x13d   :  { %604 = shalt.err (!%p601_p11)
}
 0x13e   :  { %444 = dma.vmem_to_hbm [thread:$0]  %s439_s1, 512, %s789_s5, [#allocation12], %s642_s0, %s642_s0, %s643_s21  }
 0x13f   :  { %s605_s30 = scalar_lea.vmem %s747_s18, 512  ;;  %p610_p13 = scmp.lt.s32.totalorder %s747_s18, %s747_s18 }
 0x140   :  { %p606_p12 = scmp.ne.s32.totalorder %s747_s18, %s605_s30  ;;  %p611_p0 = scmp.lt.s32.totalorder %s605_s30, %s605_s30 }
 0x142   :  { %p612_p1 = por %p611_p0, %p610_p13 }
 0x144   :  { %p613_p2 = pnand %p612_p1, %p606_p12 }
 0x146   :  { %616 = shalt.err (!%p613_p2)
}
 0x147   :  { %s617_s8 = scalar_lea.hbm %s788_s4, 512 }
 0x148   :  { %p618_p3 = scmp.ne.s32.totalorder %s788_s4, %s617_s8  ;;  %p621_p4 = scmp.lt.u32.totalorder %s617_s8, %s788_s4 }
 0x14a   :  { %p623_p5 = pnand %p621_p4, %p618_p3 }
 0x14c   :  { %626 = shalt.err (!%p623_p5)
}
 0x14d   :  { %432 = dma.vmem_to_hbm [thread:$0]  %s747_s18, 512, %s788_s4, [#allocation4], %s642_s0, %s642_s0, %s643_s21  }
 0x14e   :  { %633 = dma.done.wait [#allocation4], 512  }
 0x14f   :  { %634 = vsyncadd [#allocation4], 4294966784 }
 0x150   :  { %635 = dma.done.wait [#allocation12], 512  }
 0x151   :  { %636 = vsyncadd [#allocation12], 4294966784 }
 0x152   :  { %451 = vsyncpa [#allocation3], 1 }
 0x153   :  { %452 = vsyncpa [#allocation6], 1 }
 0x154   :  { %453 = vsyncpa [#allocation9], 1 }
 0x155   :  { %454 = vsyncpa [#allocation4], 1 }
 0x156   :  { %455 = vsyncpa [#allocation12], 1 }

</bundles_post_ra>
